<compile_context>
chip_gen: v7x
topology: tpu7x:2x2x1
jax: 0.10.0
libtpu: 0.0.40
codegen_flags: <defaults>
</compile_context>

<pallas_src>
import functools
import math

import jax
import jax.numpy as jnp
from jax import lax
from jax.experimental import pallas as pl
from jax.experimental.pallas import tpu as pltpu

# ---- model hyper-parameters (static, closed over by the kernels) ----
DT = 0.05
GAMMA = 1.0
EPSILON = 1.0


def _round_up(x, m):
    return ((x + m - 1) // m) * m


def _pad2(a, rows, cols):
    r, c = a.shape
    if r == rows and c == cols:
        return a
    return jnp.pad(a, ((0, rows - r), (0, cols - c)))


def _vmem_budget_bytes():
    """~85% of per-TensorCore VMEM, capped at 100 MiB (v5e/v6e have 128 MiB,
    v7x only 64 MiB)."""
    cap = None
    try:
        cap = getattr(pltpu.get_tpu_info(), "vmem_capacity_bytes", None)
    except Exception:
        cap = None
    if not cap:
        cap = 64 << 20  # conservative fallback = v7x per-TensorCore VMEM
    return int(min(0.85 * cap, 100 << 20))


# ---------------------------------------------------------------------------
# Generic tiled matmul + bias kernel (used for input injection and readout).
# ---------------------------------------------------------------------------
def _matmul_bias_kernel(a_ref, w_ref, b_ref, o_ref):
    o_ref[...] = (jnp.dot(a_ref[...], w_ref[...],
                          preferred_element_type=jnp.float32)
                  + b_ref[...])


def matmul_bias(a, w, b, *, tile_m=512, vmem_budget=None):
    """(M, K) @ (K, N) + (1, N) -> (M, N) f32, tiled over M."""
    M, K = a.shape
    N = w.shape[1]
    tm = min(tile_m, _round_up(M, 8))
    if vmem_budget is not None:
        def est(t):  # double-buffered A tile, weight, bias, output tile (f32)
            return 4 * (2 * t * K + 2 * K * N + 2 * t * N + 2 * N)
        while tm > 8 and est(tm) > 0.8 * vmem_budget:
            tm = max(8, _round_up(tm // 2, 8))
    Mp = _round_up(M, tm)
    if Mp != M:
        a = jnp.pad(a, ((0, Mp - M), (0, 0)))

    params = dict(dimension_semantics=("parallel",))
    if vmem_budget is not None:
        params["vmem_limit_bytes"] = int(vmem_budget)

    out = pl.pallas_call(
        _matmul_bias_kernel,
        out_shape=jax.ShapeDtypeStruct((Mp, N), jnp.float32),
        grid_spec=pltpu.PrefetchScalarGridSpec(
            num_scalar_prefetch=0,
            grid=(Mp // tm,),
            in_specs=[
                pl.BlockSpec((tm, K), lambda i: (i, 0)),
                pl.BlockSpec((K, N), lambda i: (0, 0)),
                pl.BlockSpec((1, N), lambda i: (0, 0)),
            ],
            out_specs=pl.BlockSpec((tm, N), lambda i: (i, 0)),
        ),
        compiler_params=pltpu.CompilerParams(**params),
    )(a, w, b)
    return out[:M]


# ---------------------------------------------------------------------------
# Serial coRNN recurrence: grid (batch_blocks, time_chunks), TC steps unrolled.
# ---------------------------------------------------------------------------
def _cornn_recurrence_kernel(inj_ref, rf_ref,
                             hy_out_ref, hz_out_ref, act_out_ref,
                             hy_sc, hz_sc, smm_sc, *, n_hid):
    # Time axis is grid axis 1; reset state at the start of each batch block.
    @pl.when(pl.program_id(1) == 0)
    def _():
        hy_sc[...] = jnp.zeros_like(hy_sc)
        hz_sc[...] = jnp.zeros_like(hz_sc)
        smm_sc[...] = jnp.zeros_like(smm_sc)

    # Hoist the (possibly bf16) fused recurrent weight load out of the loop.
    rf = rf_ref[...]                                  # (2*n_hid, n_hid)
    time_chunk = inj_ref.shape[0]                     # static

    def step(t, carry):
        hy, hz = carry                                # f32 (bb, n_hid) in vregs
        # Fused [hy|hz] @ [R^T ; F^T]; input comes straight from the persistent
        # state scratch (no per-step concatenate / full-state cast).
        pre = (jnp.dot(smm_sc[...], rf, preferred_element_type=jnp.float32)
               + inj_ref[t])                          # bias folded into injection
        act = jnp.tanh(pre)
        hz_new = hz + DT * (act - GAMMA * hy - EPSILON * hz)
        hy_new = hy + DT * hz_new
        hy_out_ref[t] = hy_new
        hz_out_ref[t] = hz_new
        act_out_ref[t] = act
        # Overwrite the two lane halves of the matmul-input state in place.
        smm_sc[:, :n_hid] = hy_new.astype(smm_sc.dtype)
        smm_sc[:, n_hid:] = hz_new.astype(smm_sc.dtype)
        return hy_new, hz_new

    hy, hz = lax.fori_loop(0, time_chunk, step,
                           (hy_sc[...], hz_sc[...]), unroll=True)
    hy_sc[...] = hy
    hz_sc[...] = hz


def cornn_forward(x, params, *, time_chunk=8, weight_dtype=jnp.bfloat16,
                  batch_blocks=None):
    """x: (T, B, n_inp) float32. params: dict of pre-transposed f32 weights."""
    T, B, n_inp = x.shape
    n_hid = params["wi"].shape[1]
    n_out = params["wo"].shape[1]

    budget = _vmem_budget_bytes()
    wbytes = jnp.dtype(weight_dtype).itemsize

    # ---- shape policy: lane-dense hidden/readout dims, sublane-aligned batch.
    n_hid_p = _round_up(n_hid, 128)
    n_out_p = _round_up(n_out, 128)
    Bp = _round_up(B, 8)

    # Leading "parallel" batch grid axis (2-TensorCore split where available).
    # TODO(synk): auto-detect 2-TC parts (v7x) and default batch_blocks=2 there.
    if batch_blocks is None:
        batch_blocks = 2 if (Bp >= 256 and (Bp // 2) % 8 == 0) else 1
    if Bp % batch_blocks != 0 or (Bp // batch_blocks) % 8 != 0:
        batch_blocks = 1
    bb = Bp // batch_blocks

    # ---- time-chunk size against the per-core VMEM budget.
    def ws(tci):
        rf_b = 2 * (2 * n_hid_p) * n_hid_p * wbytes          # fused weight (dbl)
        io_b = 2 * 4 * tci * bb * n_hid_p * 4                # inj + 3 outs (dbl)
        sc_b = 2 * bb * n_hid_p * 4 + bb * 2 * n_hid_p * wbytes
        return rf_b + io_b + sc_b

    tc = max(1, min(time_chunk, T))
    while tc > 1 and ws(tc) > 0.8 * budget:
        tc = max(1, tc // 2)
    Tp = _round_up(T, tc)

    # ---- pad x (cheap: n_inp << n_hid) and the weights once, up front.
    xp = x
    if Tp != T or Bp != B:
        xp = jnp.pad(x, ((0, Tp - T), (0, Bp - B), (0, 0)))
    wi = _pad2(params["wi"], n_inp, n_hid_p)
    bi = _pad2(params["bi"], 1, n_hid_p)
    r_ = _pad2(params["r"], n_hid_p, n_hid_p)
    f_ = _pad2(params["f"], n_hid_p, n_hid_p)
    wo = _pad2(params["wo"], n_hid_p, n_out_p)
    bo = _pad2(params["bo"], 1, n_out_p)

    # (1) Input injection for every timestep, off the serial path (f32).
    inj = matmul_bias(xp.reshape(Tp * Bp, n_inp), wi, bi, vmem_budget=budget)
    inj = inj.reshape(Tp, Bp, n_hid_p)

    # (2) Fused recurrent weight [R^T ; F^T], optionally bf16.
    rf = jnp.concatenate([r_, f_], axis=0).astype(weight_dtype)

    kernel = functools.partial(_cornn_recurrence_kernel, n_hid=n_hid_p)

    hy_all, hz_all, act_all = pl.pallas_call(
        kernel,
        out_shape=(
            jax.ShapeDtypeStruct((Tp, Bp, n_hid_p), jnp.float32),
            jax.ShapeDtypeStruct((Tp, Bp, n_hid_p), jnp.float32),
            jax.ShapeDtypeStruct((Tp, Bp, n_hid_p), jnp.float32),
        ),
        grid_spec=pltpu.PrefetchScalarGridSpec(
            num_scalar_prefetch=0,
            grid=(batch_blocks, Tp // tc),
            in_specs=[
                pl.BlockSpec((tc, bb, n_hid_p), lambda b, t: (t, b, 0)),      # inj chunk
                pl.BlockSpec((2 * n_hid_p, n_hid_p), lambda b, t: (0, 0)),    # fused [R;F]
            ],
            out_specs=[
                pl.BlockSpec((tc, bb, n_hid_p), lambda b, t: (t, b, 0)),      # save_hy
                pl.BlockSpec((tc, bb, n_hid_p), lambda b, t: (t, b, 0)),      # save_hz
                pl.BlockSpec((tc, bb, n_hid_p), lambda b, t: (t, b, 0)),      # save_act
            ],
            scratch_shapes=[
                pltpu.VMEM((bb, n_hid_p), jnp.float32),       # hy (persists)
                pltpu.VMEM((bb, n_hid_p), jnp.float32),       # hz (persists)
                pltpu.VMEM((bb, 2 * n_hid_p), weight_dtype),  # fused matmul input state
            ],
        ),
        compiler_params=pltpu.CompilerParams(
            dimension_semantics=("parallel", "arbitrary"),   # batch || , time serial
            vmem_limit_bytes=int(budget),
        ),
    )(inj, rf)

    # (3) Readout over all timesteps at once, lane-dense (n_out padded to 128).
    out = matmul_bias(hy_all.reshape(Tp * Bp, n_hid_p), wo, bo, vmem_budget=budget)
    out = out.reshape(Tp, Bp, n_out_p)[:T, :B, :n_out]

    hy_all = hy_all[:T, :B, :n_hid]
    hz_all = hz_all[:T, :B, :n_hid]
    act_all = act_all[:T, :B, :n_hid]
    return out, hy_all, hz_all, act_all


# ---------------------------------------------------------------------------
# Pure-JAX reference of the same forward (for correctness checks).
# ---------------------------------------------------------------------------
def cornn_reference(x, params):
    T, B, _ = x.shape
    n_hid = params["wi"].shape[1]

    def step(carry, x_t):
        hy, hz = carry
        act = jnp.tanh(hy @ params["r"] + hz @ params["f"]
                       + x_t @ params["wi"] + params["bi"])
        hz = hz + DT * (act - GAMMA * hy - EPSILON * hz)
        hy = hy + DT * hz
        out = hy @ params["wo"] + params["bo"]
        return (hy, hz), (out, hy, hz, act)

    init = (jnp.zeros((B, n_hid), jnp.float32), jnp.zeros((B, n_hid), jnp.float32))
    _, (out, hy, hz, act) = lax.scan(step, init, x)
    return out, hy, hz, act


def init_params(key, n_inp, n_hid, n_out):
    """Deterministic init mimicking torch.nn.Linear (uniform +-1/sqrt(fan_in)).
    Weights are stored pre-transposed: (in_features, out_features)."""
    ks = jax.random.split(key, 6)

    def u(k, shape, fan_in):
        b = 1.0 / math.sqrt(fan_in)
        return jax.random.uniform(k, shape, jnp.float32, -b, b)

    return {
        "wi": u(ks[0], (n_inp, n_hid), n_inp),   # I_ext weight^T
        "bi": u(ks[1], (1, n_hid), n_inp),       # I_ext bias
        "r":  u(ks[2], (n_hid, n_hid), n_hid),   # R weight^T (no bias)
        "f":  u(ks[3], (n_hid, n_hid), n_hid),   # F weight^T (no bias)
        "wo": u(ks[4], (n_hid, n_out), n_hid),   # readout weight^T
        "bo": u(ks[5], (1, n_out), n_hid),       # readout bias
    }


if __name__ == "__main__":
    # Use accurate f32 matmuls for the reference so comparisons are meaningful.
    jax.config.update("jax_default_matmul_precision", "highest")

    T, B, n_inp, n_hid, n_out = 8, 4, 16, 32, 8

    key = jax.random.PRNGKey(0)
    k_x, k_p = jax.random.split(key)
    x = jax.random.normal(k_x, (T, B, n_inp), jnp.float32)
    params = init_params(k_p, n_inp, n_hid, n_out)

    refs = jax.block_until_ready(cornn_reference(x, params))

    # Exact-semantics path: f32 recurrent weights in the kernel.
    outs_f32 = jax.block_until_ready(
        cornn_forward(x, params, time_chunk=8, weight_dtype=jnp.float32))
    for o, r in zip(outs_f32, refs):
        assert o.shape == r.shape, (o.shape, r.shape)
        assert jnp.allclose(o, r, atol=2e-3, rtol=2e-3)

    # Performance path: bf16 recurrent weights, f32 state/accumulation.
    # (bf16 error compounds with T; tolerance chosen for this short sequence.)
    outs_bf16 = jax.block_until_ready(
        cornn_forward(x, params, time_chunk=8, weight_dtype=jnp.bfloat16))
    for o, r in zip(outs_bf16, refs):
        assert o.shape == r.shape, (o.shape, r.shape)
        assert jnp.allclose(o, r, atol=5e-2, rtol=5e-2)

    print("KERNEL_OK")
</pallas_src>

<mosaic_0001>
module attributes {stable_mosaic.version = 11 : i64} {
  func.func @_matmul_bias_kernel(%arg0: i32, %arg1: memref<64x16xf32, #tpu.memory_space<vmem>>, %arg2: memref<16x128xf32, #tpu.memory_space<vmem>>, %arg3: memref<1x128xf32, #tpu.memory_space<vmem>>, %arg4: memref<64x128xf32, #tpu.memory_space<vmem>>) attributes {dimension_semantics = [#tpu.dimension_semantics<parallel>], iteration_bounds = array<i64: 1>, scalar_prefetch = 0 : i64, scratch_operands = 0 : i64, tpu.core_type = #tpu.core_type<tc>, window_params = [{transform_indices = @transform_0, window_bounds = array<i64: 64, 16>}, {pipeline_mode = #tpu.pipeline_mode<synchronous>, transform_indices = @transform_1, window_bounds = array<i64: 16, 128>}, {pipeline_mode = #tpu.pipeline_mode<synchronous>, transform_indices = @transform_2, window_bounds = array<i64: 1, 128>}, {transform_indices = @transform_3, window_bounds = array<i64: 64, 128>}]} {
    %c0 = arith.constant 0 : index
    %c0_0 = arith.constant 0 : index
    %0 = vector.load %arg1[%c0, %c0_0] : memref<64x16xf32, #tpu.memory_space<vmem>>, vector<64x16xf32>
    %c0_1 = arith.constant 0 : index
    %c0_2 = arith.constant 0 : index
    %1 = vector.load %arg2[%c0_1, %c0_2] : memref<16x128xf32, #tpu.memory_space<vmem>>, vector<16x128xf32>
    %cst = arith.constant dense<0.000000e+00> : vector<64x128xf32>
    %2 = tpu.matmul %0, %1, %cst {dimension_numbers = #tpu.dot_dimension_numbers<[1], [0], [0], [1], [0, 0, 1, 1], [], []>, precision = #tpu.contract_precision<fp32>} : vector<64x16xf32>, vector<16x128xf32>, vector<64x128xf32> -> vector<64x128xf32>
    %c0_3 = arith.constant 0 : index
    %c0_4 = arith.constant 0 : index
    %3 = vector.load %arg3[%c0_3, %c0_4] : memref<1x128xf32, #tpu.memory_space<vmem>>, vector<1x128xf32>
    %4 = vector.broadcast %3 : vector<1x128xf32> to vector<64x128xf32>
    %5 = arith.addf %2, %4 : vector<64x128xf32>
    %c0_5 = arith.constant 0 : index
    %c0_6 = arith.constant 0 : index
    %6 = vector.load %arg4[%c0_5, %c0_6] : memref<64x128xf32, #tpu.memory_space<vmem>>, vector<64x128xf32>
    tpu.vector_store %arg4[%c0_5, %c0_6], %5 {strides = array<i32>} : memref<64x128xf32, #tpu.memory_space<vmem>>, vector<64x128xf32>,
    return
  }
  func.func @transform_0(%arg0: i32) -> (i32, i32) {
    %c0_i32 = arith.constant 0 : i32
    %c0_i32_0 = arith.constant 0 : i32
    return %arg0, %c0_i32 : i32, i32
  }
  func.func @transform_1(%arg0: i32) -> (i32, i32) {
    %c0_i32 = arith.constant 0 : i32
    %c0_i32_0 = arith.constant 0 : i32
    %c0_i32_1 = arith.constant 0 : i32
    return %c0_i32, %c0_i32_0 : i32, i32
  }
  func.func @transform_2(%arg0: i32) -> (i32, i32) {
    %c0_i32 = arith.constant 0 : i32
    %c0_i32_0 = arith.constant 0 : i32
    %c0_i32_1 = arith.constant 0 : i32
    return %c0_i32, %c0_i32_0 : i32, i32
  }
  func.func @transform_3(%arg0: i32) -> (i32, i32) {
    %c0_i32 = arith.constant 0 : i32
    %c0_i32_0 = arith.constant 0 : i32
    return %arg0, %c0_i32 : i32, i32
  }
}

</mosaic_0001>

<bundles_post_ra>
// kernel: tpu_custom_call.1
= control target key start
LH: loop header
LB: loop body
LE: loop exit
PB: predicated region body
PF: predicated region fallthrough
CT: control target
= control target key end

     0   :  { %vm32_vm0 = vcmask 130048   ;;  %s1247_s0 = inlined_call_operand.vmem [shape: f32[64,16], index: 0, kind: input, shape index: {}]   ;;  %s1248_s1 = inlined_call_operand.vmem [shape: f32[16,128], index: 1, kind: input, shape index: {}]   ;;  %s1249_s2 = inlined_call_operand.vmem [shape: f32[1,128], index: 2, kind: input, shape index: {}]   ;;  %s1250_s3 = inlined_call_operand.hbm [shape: f32[64,128], index: 3, kind: output, shape index: {}]  }
   0x1   :  { %v23_v0 = vld [vmem:[%s1248_s1] sm:$0xff]  ;;  %v24_v1 = vld [vmem:[%s1248_s1 + $0x8] sm:$0xff]  ;;  %v17_v7 = vld [vmem:[%s1247_s0 + $0x10] sm:$0xff] }
   0x2   :  { %v15_v2 = vld [vmem:[%s1247_s0] sm:$0xff]  ;;  %v58_v3 = vand.u32 4294901760, %v23_v0  ;;  %v61_v4 = vand.u32 4294901760, %v24_v1  ;;  %v16_v6 = vld [vmem:[%s1247_s0 + $0x8] sm:$0xff]  ;;  %v18_v8 = vld [vmem:[%s1247_s0 + $0x18] sm:$0xff]  ;;  %v40_v11 = vsel %vm32_vm0, %v17_v7, 0 }
   0x3   :  { %v34_v5 = vsel %vm32_vm0, %v15_v2, 0  ;;  %v37_v10 = vsel %vm32_vm0, %v16_v6, 0  ;;  %v43_v12 = vsel %vm32_vm0, %v18_v8, 0  ;;  %v19_v13 = vld [vmem:[%s1247_s0 + $0x20] sm:$0xff]  ;;  %v1151_v16 = vand.u32 4294901760, %v40_v11  ;;  %v20_v18 = vld [vmem:[%s1247_s0 + $0x28] sm:$0xff] }
   0x4   :  { %v1139_v9 = vand.u32 4294901760, %v34_v5  ;;  %v1147_v14 = vpack.c.bf16 %v61_v4, %v58_v3  ;;  %v1149_v15 = vand.u32 4294901760, %v37_v10  ;;  %v206_v17 = vsub.f32 %v23_v0, %v58_v3 }
   0x5   :  { %8 = vsyncpa [#allocation3], 0  ;;  %v213_v20 = vsub.f32 %v24_v1, %v61_v4  ;;  %v1159_v21 = vand.u32 4294901760, %v43_v12  ;;  %v46_v22 = vsel %vm32_vm0, %v19_v13, 0  ;;  %v1168_v24 = vsub.f32 %v40_v11, %v1151_v16  ;;  %v21_v39 = vld [vmem:[%s1247_s0 + $0x30] sm:$0xff]  ;;  %v22_v48 = vld [vmem:[%s1247_s0 + $0x38] sm:$0xff] }
   0x6   :  { %v1157_v19 = vsub.f32 %v34_v5, %v1139_v9  ;;  %1011 = vmatprep.subr.bf16.mxu0 %v1147_v14  ;;  %999 = vmatprep.subr.bf16.mxu1 %v1147_v14  ;;  %v1165_v23 = vsub.f32 %v37_v10, %v1149_v15  ;;  %v207_v25 = vand.u32 4294901760, %v206_v17  ;;  %v1170_v26 = vand.u32 4294901760, %v46_v22  ;;  %v841_v10 = vld [vmem:[%s1249_s2] ss:$0 sm:$0xff]  ;;  %s1097_s2 = smov [#allocation2]  }
   0x7   :  { %1013 = vmatpush3.bf16.msra.mxu0 %v1147_v14  ;;  %1001 = vmatpush3.bf16.msra.mxu1 %v1147_v14  ;;  %v214_v28 = vand.u32 4294901760, %v213_v20  ;;  %v1176_v29 = vsub.f32 %v43_v12, %v1159_v21  ;;  %v49_v30 = vsel %vm32_vm0, %v20_v18, 0  ;;  %v146_v32 = vand.u32 4294901760, %v1168_v24  ;;  %s830_s5 = sshll.u32 %s1097_s2, 4  ;;  %s831_s5 = int_to_ptr.vmem [resolvable:$true] %s830_s5 }
   0x8   :  { %v126_v27 = vand.u32 4294901760, %v1157_v19  ;;  %v136_v31 = vand.u32 4294901760, %v1165_v23  ;;  %v208_v33 = vsub.f32 %v206_v17, %v207_v25  ;;  %v1182_v34 = vsub.f32 %v46_v22, %v1170_v26  ;;  %s1073_s6 = scalar_lea.vmem %s831_s5, 1024  ;;  %p1078_p1 = scmp.lt.s32.totalorder %s831_s5, %s831_s5 }
   0x9   :  { %v215_v36 = vsub.f32 %v213_v20, %v214_v28  ;;  %v156_v37 = vand.u32 4294901760, %v1176_v29  ;;  %v1014_v38 = vpack.c.bf16 %v214_v28, %v207_v25  ;;  %v147_v42 = vsub.f32 %v1168_v24, %v146_v32  ;;  %p1074_p0 = scmp.ne.s32.totalorder %s831_s5, %s1073_s6  ;;  %p1079_p2 = scmp.lt.s32.totalorder %s1073_s6, %s1073_s6 }
   0xa   :  { %954 = vmatprep.mubr.f32.mxu0 %v126_v27  ;;  %v127_v35 = vsub.f32 %v1157_v19, %v126_v27  ;;  %v137_v40 = vsub.f32 %v1165_v23, %v136_v31  ;;  %v209_v41 = vand.u32 4294901760, %v208_v33  ;;  %v166_v43 = vand.u32 4294901760, %v1182_v34 }
   0xb   :  { %955 = vmatmul.mubr.f32.vlgmr.msra.gmra.mrb[0].mxu0 %v136_v31  ;;  %v216_v45 = vand.u32 4294901760, %v215_v36  ;;  %1015 = vmatprep.subr.bf16.mxu0 %v1014_v38  ;;  %v157_v46 = vsub.f32 %v1176_v29, %v156_v37  ;;  %v1193_v47 = vand.u32 4294901760, %v49_v30  ;;  %v148_v50 = vand.u32 4294901760, %v147_v42  ;;  %p1080_p3 = por %p1079_p2, %p1078_p1 }
   0xc   :  { %v128_v44 = vand.u32 4294901760, %v127_v35  ;;  %957 = vmatprep.mubr.f32.mxu0 %v146_v32  ;;  %v138_v49 = vand.u32 4294901760, %v137_v40  ;;  %1017 = vmatpush3.bf16.msra.mxu0 %v1014_v38  ;;  %v167_v51 = vsub.f32 %v1182_v34, %v166_v43  ;;  %v52_v52 = vsel %vm32_vm0, %v21_v39, 0 }
   0xd   :  { %v1002_v53 = vpack.c.bf16 %v216_v45, %v209_v41  ;;  %v1201_v54 = vsub.f32 %v49_v30, %v1193_v47  ;;  %v184_v55 = vand.u32 4294901760, %v52_v52  ;;  %1019 = vmatprep.subr.bf16.mxu0 %v1147_v14  ;;  %v158_v56 = vand.u32 4294901760, %v157_v46  ;;  %p1081_p4 = pnand %p1080_p3, %p1074_p0 }
   0xe   :  { %906 = vmatprep.mubr.f32.mxu1 %v128_v44  ;;  %v55_v57 = vsel %vm32_vm0, %v22_v48, 0  ;;  %v1006_v58 = vpack.c.bf16 %v213_v20, %v206_v17  ;;  %v168_v60 = vand.u32 4294901760, %v167_v51 }
   0xf   :  { %907 = vmatmul.mubr.f32.vlgmr.msra.gmra.mrb[0].mxu1 %v138_v49  ;;  %958 = vmatmul.mubr.f32.gmra.mrb[2].mxu0 %v156_v37  ;;  %v176_v59 = vand.u32 4294901760, %v1201_v54  ;;  %v185_v61 = vsub.f32 %v52_v52, %v184_v55  ;;  %v194_v62 = vand.u32 4294901760, %v55_v57 }
  0x10   :  { %1003 = vmatprep.subr.bf16.mxu1 %v1002_v53  ;;  %909 = vmatprep.mubr.f32.mxu1 %v148_v50 }
  0x11   :  { %1005 = vmatpush3.bf16.msra.mxu1 %v1002_v53  ;;  %960 = vmatprep.mubr.f32.mxu0 %v166_v43  ;;  %v186_v63 = vand.u32 4294901760, %v185_v61  ;;  %v177_v0 = vsub.f32 %v1201_v54, %v176_v59  ;;  %v195_v1 = vsub.f32 %v55_v57, %v194_v62 }
  0x12   :  { %1007 = vmatprep.subr.bf16.mxu1 %v1006_v58 }
  0x13   :  { %910 = vmatmul.mubr.f32.gmra.mrb[2].mxu1 %v158_v56  ;;  %961 = vmatmul.mubr.f32.gmra.mrb[4].mxu0 %v176_v59  ;;  %v178_v2 = vand.u32 4294901760, %v177_v0  ;;  %v196_v3 = vand.u32 4294901760, %v195_v1  ;;  %v187_v4 = vsub.f32 %v185_v61, %v186_v63 }
  0x14   :  { %912 = vmatprep.mubr.f32.mxu1 %v168_v60  ;;  %963 = vmatprep.mubr.f32.mxu0 %v186_v63 }
  0x15   :  { %v188_v5 = vand.u32 4294901760, %v187_v4  ;;  %v197_v6 = vsub.f32 %v195_v1, %v196_v3 }
  0x17   :  { %913 = vmatmul.mubr.f32.gmra.mrb[4].mxu1 %v178_v2  ;;  %964 = vmatmul.mubr.f32.gmra.mrb[6].mxu0 %v196_v3  ;;  %v198_v7 = vand.u32 4294901760, %v197_v6 }
  0x18   :  { %915 = vmatprep.mubr.f32.mxu1 %v188_v5  ;;  %970 = vmatprep.mubr.f32.mxu0 %v1139_v9 }
  0x1b   :  { %916 = vmatmul.mubr.f32.gmra.mrb[6].mxu1 %v198_v7  ;;  %971 = vmatmul.mubr.f32.vlgmr.msra.gmra.mrb[0].mxu0 %v1149_v15 }
  0x1c   :  { %922 = vmatprep.mubr.f32.mxu1 %v1139_v9  ;;  %973 = vmatprep.mubr.f32.mxu0 %v1151_v16 }
  0x1d   :  { %1021 = vmatpush3.bf16.msra.mxu0 %v1147_v14 }
  0x1f   :  { %923 = vmatmul.mubr.f32.vlgmr.msra.gmra.mrb[0].mxu1 %v1149_v15  ;;  %974 = vmatmul.mubr.f32.gmra.mrb[2].mxu0 %v1159_v21 }
  0x20   :  { %1009 = vmatpush3.bf16.msra.mxu1 %v1006_v58  ;;  %925 = vmatprep.mubr.f32.mxu1 %v1151_v16 }
  0x21   :  { %976 = vmatprep.mubr.f32.mxu0 %v1170_v26 }
  0x23   :  { %926 = vmatmul.mubr.f32.gmra.mrb[2].mxu1 %v1159_v21  ;;  %977 = vmatmul.mubr.f32.gmra.mrb[4].mxu0 %v1193_v47 }
  0x24   :  { %928 = vmatprep.mubr.f32.mxu1 %v1170_v26  ;;  %979 = vmatprep.mubr.f32.mxu0 %v184_v55 }
  0x27   :  { %929 = vmatmul.mubr.f32.gmra.mrb[4].mxu1 %v1193_v47  ;;  %980 = vmatmul.mubr.f32.gmra.mrb[6].mxu0 %v194_v62 }
  0x28   :  { %931 = vmatprep.mubr.f32.mxu1 %v184_v55  ;;  %986 = vmatprep.mubr.f32.mxu0 %v1139_v9 }
  0x2b   :  { %932 = vmatmul.mubr.f32.gmra.mrb[6].mxu1 %v194_v62  ;;  %987 = vmatmul.mubr.f32.vlgmr.msra.gmra.mrb[0].mxu0 %v1149_v15 }
  0x2c   :  { %938 = vmatprep.mubr.f32.mxu1 %v1157_v19  ;;  %989 = vmatprep.mubr.f32.mxu0 %v1151_v16 }
  0x2f   :  { %939 = vmatmul.mubr.f32.vlgmr.msra.gmra.mrb[0].mxu1 %v1165_v23  ;;  %990 = vmatmul.mubr.f32.gmra.mrb[2].mxu0 %v1159_v21 }
  0x30   :  { %941 = vmatprep.mubr.f32.mxu1 %v1168_v24  ;;  %992 = vmatprep.mubr.f32.mxu0 %v1170_v26 }
  0x33   :  { %942 = vmatmul.mubr.f32.gmra.mrb[2].mxu1 %v1176_v29  ;;  %993 = vmatmul.mubr.f32.gmra.mrb[4].mxu0 %v1193_v47 }
  0x34   :  { %944 = vmatprep.mubr.f32.mxu1 %v1182_v34  ;;  %995 = vmatprep.mubr.f32.mxu0 %v184_v55 }
  0x37   :  { %945 = vmatmul.mubr.f32.gmra.mrb[4].mxu1 %v1201_v54  ;;  %996 = vmatmul.mubr.f32.gmra.mrb[6].mxu0 %v194_v62 }
  0x38   :  { %947 = vmatprep.mubr.f32.mxu1 %v185_v61 }
  0x3b   :  { %948 = vmatmul.mubr.f32.gmra.mrb[6].mxu1 %v195_v1 }
  0xfe   :  { %v988_v8 = vpop.f32.mrb[0].mxu0 }
  0xff   :  { %v771_v9 = vpop.f32.mrb[1].mxu0 }
 0x102   :  { %v940_v11 = vpop.f32.mrb[0].mxu1  ;;  %v991_v12 = vpop.f32.mrb[2].mxu0 }
 0x103   :  { %v1022_v13 = vadd.f32 %v940_v11, %v841_v10  ;;  %v399_v14 = vpop.f32.mrb[1].mxu1  ;;  %v783_v15 = vpop.f32.mrb[3].mxu0 }
 0x104   :  { %v1024_v16 = vadd.f32 %v841_v10, %v399_v14 }
 0x105   :  { %v1023_v17 = vadd.f32 %v1022_v13, %v988_v8 }
 0x106   :  { %v1025_v18 = vadd.f32 %v1024_v16, %v771_v9  ;;  %v943_v19 = vpop.f32.mrb[2].mxu1  ;;  %v994_v20 = vpop.f32.mrb[4].mxu0 }
 0x107   :  { %818 = vst [vmem:[#allocation2 + $0x8] sm:$0xff] %v1023_v17  ;;  %v1026_v21 = vadd.f32 %v943_v19, %v841_v10  ;;  %v413_v22 = vpop.f32.mrb[3].mxu1  ;;  %v795_v23 = vpop.f32.mrb[5].mxu0 }
 0x108   :  { %817 = vst [vmem:[#allocation2] sm:$0xff] %v1025_v18  ;;  %v1028_v24 = vadd.f32 %v841_v10, %v413_v22 }
 0x109   :  { %v1027_v25 = vadd.f32 %v1026_v21, %v991_v12 }
 0x10a   :  { %v1029_v26 = vadd.f32 %v1028_v24, %v783_v15  ;;  %v946_v27 = vpop.f32.mrb[4].mxu1  ;;  %v997_v28 = vpop.f32.mrb[6].mxu0 }
 0x10b   :  { %820 = vst [vmem:[#allocation2 + $0x18] sm:$0xff] %v1027_v25  ;;  %v1030_v29 = vadd.f32 %v946_v27, %v841_v10  ;;  %v427_v30 = vpop.f32.mrb[5].mxu1  ;;  %v807_v31 = vpop.f32.mrb[7].mxu0 }
 0x10c   :  { %819 = vst [vmem:[#allocation2 + $0x10] sm:$0xff] %v1029_v26  ;;  %v1032_v32 = vadd.f32 %v841_v10, %v427_v30 }
 0x10d   :  { %v1031_v33 = vadd.f32 %v1030_v29, %v994_v20 }
 0x10e   :  { %v1033_v34 = vadd.f32 %v1032_v32, %v795_v23  ;;  %v949_v35 = vpop.f32.mrb[6].mxu1 }
 0x10f   :  { %822 = vst [vmem:[#allocation2 + $0x28] sm:$0xff] %v1031_v33  ;;  %v1034_v36 = vadd.f32 %v949_v35, %v841_v10  ;;  %v441_v37 = vpop.f32.mrb[7].mxu1 }
 0x110   :  { %821 = vst [vmem:[#allocation2 + $0x20] sm:$0xff] %v1033_v34  ;;  %v1036_v38 = vadd.f32 %v841_v10, %v441_v37 }
 0x111   :  { %v1035_v39 = vadd.f32 %v1034_v36, %v997_v28 }
 0x112   :  { %v1037_v40 = vadd.f32 %v1036_v38, %v807_v31 }
 0x113   :  { %824 = vst [vmem:[#allocation2 + $0x38] sm:$0xff] %v1035_v39 }
 0x114   :  { %823 = vst [vmem:[#allocation2 + $0x30] sm:$0xff] %v1037_v40 }
 0x115   :  { %1084 = shalt.err (!%p1081_p4)
}
 0x116   :  { %s1085_s9 = scalar_lea.hbm %s1250_s3, 1024 }
 0x117   :  { %p1086_p5 = scmp.ne.s32.totalorder %s1250_s3, %s1085_s9  ;;  %p1089_p6 = scmp.lt.u32.totalorder %s1085_s9, %s1250_s3 }
 0x119   :  { %p1091_p7 = pnand %p1089_p6, %p1086_p5 }
 0x11b   :  { %1094 = shalt.err (!%p1091_p7)
}
 0x11c   :  { %s1098_s14 = smov 128   ;;  %s1099_s15 = smov 8  }
 0x11d   :  { %836 = dma.vmem_to_hbm [thread:$0]  %s831_s5, 1024, %s1250_s3, [#allocation3], %s1098_s14, %s1098_s14, %s1099_s15  }
 0x11e   :  { %1095 = dma.done.wait [#allocation3], 1024  }
 0x11f   :  { %1096 = vsyncadd [#allocation3], 4294966272 }
 0x120   :  { %840 = vsyncpa [#allocation3], 1 }

</bundles_post_ra>
